<compile_context>
chip_gen: v6e
topology: v6e:2x2x1
jax: 0.10.0
libtpu: 0.0.40
codegen_flags: <defaults>
</compile_context>

<pallas_src>
import functools

import jax
import jax.numpy as jnp
from jax import lax
from jax.experimental import pallas as pl
from jax.experimental.pallas import tpu as pltpu


def _convlstm_kernel(comb_ref, w_ref, b_ref, c_ref, newh_ref, newc_ref,
                     *, RB, W, K, C, hidden):
    """One grid step == one (batch, row-band) tile.

    comb_ref : (1, RB+K-1, W+K-1, C)   padded concat(x, h) row band, NHWC, bf16
    w_ref    : (K*K*C, 4*hidden)       conv weight, rows ordered (ky, kx, c), bf16
    b_ref    : (1, 4*hidden)           conv bias, f32
    c_ref    : (1, hidden, RB*W)       previous cell state (channel-major), f32
    newh_ref : (1, hidden, RB*W)
    newc_ref : (1, hidden, RB*W)
    """
    band = comb_ref[0]                                     # (RB+K-1, Wp, C) bf16

    # im2col step 1 (W direction), built once and reused for all K row shifts:
    #   cols[r, x, kx*C + c] = comb_p[row0 + r, x + kx, c]
    cols = jnp.concatenate([band[:, kx:kx + W, :] for kx in range(K)], axis=-1)

    # im2col step 2 (H direction): leading-axis slices are cheap; the lane
    # concat fattens the MXU contraction to K*K*C.
    patches = jnp.concatenate([cols[ky:ky + RB] for ky in range(K)], axis=-1)
    patches = patches.reshape(RB * W, K * K * C)           # (M, K*K*C) bf16

    # Single MXU matmul, f32 accumulation; bias folded into the epilogue add.
    A = jnp.dot(patches, w_ref[...],
                preferred_element_type=jnp.float32) + b_ref[...]   # (M, 4h) f32

    # One (M, 4h) -> (4h, M) transpose (XLU) so gates split along aligned
    # 32-row sublane groups and all elementwise math / stores use dense
    # (hidden, M) tiles with a 128-lane last dim.
    At = A.T                                               # (4h, M) f32

    i = jax.nn.sigmoid(At[0 * hidden:1 * hidden])
    f = jax.nn.sigmoid(At[1 * hidden:2 * hidden])
    o = jax.nn.sigmoid(At[2 * hidden:3 * hidden])
    g = jnp.tanh(At[3 * hidden:4 * hidden])

    c_prev = c_ref[0].astype(jnp.float32)                  # (hidden, M) f32
    new_c = f * c_prev + i * g
    new_h = o * jnp.tanh(new_c)

    newc_ref[...] = new_c[None].astype(newc_ref.dtype)
    newh_ref[...] = new_h[None].astype(newh_ref.dtype)


def _pick_row_band(H, W):
    """Row-band height RB (a divisor of H). RB*W is the matmul M-dim and the
    lane width of the state/output blocks, so prefer the smallest band whose
    footprint is a multiple of 128 and >= 128 (bounds live ranges, dense
    stores); otherwise fall back to a single band (full-dim block is legal)."""
    for rb in range(1, H + 1):
        if H % rb == 0 and rb * W >= 128 and (rb * W) % 128 == 0:
            return rb
    return H


def conv_lstm_cell(x_nchw, h_nchw, c_nchw, weight_oikk, bias, kernel_size):
    """ConvLSTMCell.forward. Inputs in PyTorch NCHW convention; returns NCHW."""
    B, Cin, H, W = x_nchw.shape
    hidden = h_nchw.shape[1]
    K = kernel_size
    pad = (K - 1) // 2
    C_tot = Cin + hidden
    four_h = 4 * hidden
    Wp = W + 2 * pad

    RB = _pick_row_band(H, W)
    NB = H // RB
    RBH = RB + K - 1          # band height including halo rows
    M = RB * W

    # ---- glue (plain JAX): layout change, concat, pad, band split, repack ----
    x = jnp.transpose(x_nchw, (0, 2, 3, 1))                # NHWC
    h = jnp.transpose(h_nchw, (0, 2, 3, 1))
    comb = jnp.concatenate([x, h], axis=-1).astype(jnp.bfloat16)   # bf16 operand
    comb_p = jnp.pad(comb, ((0, 0), (pad, pad), (pad, pad), (0, 0)))
    # Overlapping row bands (K-1 halo rows duplicated, (K-1)/RB HBM overhead)
    # so a plain Blocked BlockSpec can address them.
    comb_bands = jnp.stack(
        [comb_p[:, j * RB:j * RB + RBH] for j in range(NB)], axis=1
    ).reshape(B * NB, RBH, Wp, C_tot)

    # PyTorch conv weight (4h, C_tot, K, K) -> (K*K*C_tot, 4h); rows ordered
    # (ky, kx, c) to match the in-kernel im2col. bf16 operand, f32 bias.
    w2 = jnp.transpose(weight_oikk, (2, 3, 1, 0)).reshape(K * K * C_tot, four_h)
    w2 = w2.astype(jnp.bfloat16)
    b2 = bias.reshape(1, four_h).astype(jnp.float32)

    # Cell state / outputs as channel-major flat slabs: pure reshape of NCHW,
    # so every block is a lane-dense (hidden, RB*W) tile and no output
    # transpose is needed in the wrapper.
    c_flat = c_nchw.reshape(B, hidden, H * W)

    kernel = functools.partial(_convlstm_kernel, RB=RB, W=W, K=K,
                               C=C_tot, hidden=hidden)

    new_h, new_c = pl.pallas_call(
        kernel,
        out_shape=(jax.ShapeDtypeStruct((B, hidden, H * W), x_nchw.dtype),
                   jax.ShapeDtypeStruct((B, hidden, H * W), x_nchw.dtype)),
        grid_spec=pltpu.PrefetchScalarGridSpec(
            num_scalar_prefetch=0,
            grid=(B, NB),
            in_specs=[
                pl.BlockSpec((1, RBH, Wp, C_tot),
                             lambda bb, jj: (bb * NB + jj, 0, 0, 0)),
                # Weight / bias are grid-invariant (constant index map); their
                # double-buffered VMEM cost is negligible at these sizes.
                # TODO(synk): pipeline_mode=pl.Buffered(1) for single-buffered
                # resident weights once production sizes make it worthwhile.
                pl.BlockSpec((K * K * C_tot, four_h), lambda bb, jj: (0, 0)),
                pl.BlockSpec((1, four_h), lambda bb, jj: (0, 0)),
                pl.BlockSpec((1, hidden, M), lambda bb, jj: (bb, 0, jj)),
            ],
            out_specs=[
                pl.BlockSpec((1, hidden, M), lambda bb, jj: (bb, 0, jj)),
                pl.BlockSpec((1, hidden, M), lambda bb, jj: (bb, 0, jj)),
            ],
        ),
        compiler_params=pltpu.CompilerParams(
            dimension_semantics=("parallel", "parallel"),
            vmem_limit_bytes=32 * 1024 * 1024),
    )(comb_bands, w2, b2, c_flat)

    # Channel-major flat -> NCHW is a free reshape.
    return (new_h.reshape(B, hidden, H, W), new_c.reshape(B, hidden, H, W))


def _reference(x_nchw, h_nchw, c_nchw, weight_oikk, bias, kernel_size):
    """Plain-JAX reference mirroring the PyTorch forward (all f32)."""
    hidden = h_nchw.shape[1]
    pad = (kernel_size - 1) // 2
    comb = jnp.concatenate([x_nchw, h_nchw], axis=1)   # NCHW
    A = lax.conv_general_dilated(
        comb, weight_oikk, window_strides=(1, 1),
        padding=[(pad, pad), (pad, pad)],
        dimension_numbers=("NCHW", "OIHW", "NCHW"))
    A = A + bias.reshape(1, -1, 1, 1)
    ai, af, ao, ag = jnp.split(A, 4, axis=1)
    i = jax.nn.sigmoid(ai)
    f = jax.nn.sigmoid(af)
    o = jax.nn.sigmoid(ao)
    g = jnp.tanh(ag)
    new_c = f * c_nchw + i * g
    new_h = o * jnp.tanh(new_c)
    return new_h, new_c


if __name__ == "__main__":
    B, Cin, H, W = 2, 4, 16, 16
    hidden = 32
    K = 3

    key = jax.random.PRNGKey(0)
    k1, k2, k3, k4, k5 = jax.random.split(key, 5)

    x = jax.random.normal(k1, (B, Cin, H, W), dtype=jnp.float32)
    h = jax.random.normal(k2, (B, hidden, H, W), dtype=jnp.float32)
    c = jax.random.normal(k3, (B, hidden, H, W), dtype=jnp.float32)

    # Deterministic parameter init (matches nn.Conv2d shapes:
    # weight (4*hidden, Cin+hidden, K, K), bias (4*hidden,))
    fan_in = (Cin + hidden) * K * K
    bound = 1.0 / (fan_in ** 0.5)
    weight = jax.random.uniform(k4, (4 * hidden, Cin + hidden, K, K),
                                minval=-bound, maxval=bound, dtype=jnp.float32)
    bias = jax.random.uniform(k5, (4 * hidden,),
                              minval=-bound, maxval=bound, dtype=jnp.float32)

    new_h, new_c = conv_lstm_cell(x, h, c, weight, bias, K)
    jax.block_until_ready((new_h, new_c))

    ref_h, ref_c = _reference(x, h, c, weight, bias, K)
    # bf16 matmul operands + f32 accumulation => ~1e-3-level deltas; 2e-2 bound.
    assert jnp.allclose(new_h, ref_h, atol=2e-2, rtol=2e-2)
    assert jnp.allclose(new_c, ref_c, atol=2e-2, rtol=2e-2)

    print("KERNEL_OK")
</pallas_src>

<mosaic_0001>
module attributes {stable_mosaic.version = 11 : i64} {
  func.func @_convlstm_kernel(%arg0: i32, %arg1: i32, %arg2: memref<1x10x18x36xbf16, #tpu.memory_space<vmem>>, %arg3: memref<324x128xbf16, #tpu.memory_space<vmem>>, %arg4: memref<1x128xf32, #tpu.memory_space<vmem>>, %arg5: memref<1x32x128xf32, #tpu.memory_space<vmem>>, %arg6: memref<1x32x128xf32, #tpu.memory_space<vmem>>, %arg7: memref<1x32x128xf32, #tpu.memory_space<vmem>>) attributes {dimension_semantics = [#tpu.dimension_semantics<parallel>, #tpu.dimension_semantics<parallel>], iteration_bounds = array<i64: 2, 2>, scalar_prefetch = 0 : i64, scratch_operands = 0 : i64, tpu.core_type = #tpu.core_type<tc>, window_params = [{transform_indices = @transform_0, window_bounds = array<i64: 1, 10, 18, 36>}, {pipeline_mode = #tpu.pipeline_mode<synchronous>, transform_indices = @transform_1, window_bounds = array<i64: 324, 128>}, {pipeline_mode = #tpu.pipeline_mode<synchronous>, transform_indices = @transform_2, window_bounds = array<i64: 1, 128>}, {transform_indices = @transform_3, window_bounds = array<i64: 1, 32, 128>}, {transform_indices = @transform_4, window_bounds = array<i64: 1, 32, 128>}, {transform_indices = @transform_5, window_bounds = array<i64: 1, 32, 128>}]} {
    %c0 = arith.constant 0 : index
    %c0_0 = arith.constant 0 : index
    %c0_1 = arith.constant 0 : index
    %c0_2 = arith.constant 0 : index
    %0 = vector.load %arg2[%c0, %c0_0, %c0_1, %c0_2] : memref<1x10x18x36xbf16, #tpu.memory_space<vmem>>, vector<1x10x18x36xbf16>
    %1 = vector.shape_cast %0 : vector<1x10x18x36xbf16> to vector<10x18x36xbf16>
    %2 = vector.extract_strided_slice %1 {offsets = [0, 0, 0], sizes = [10, 16, 36], strides = [1, 1, 1]} : vector<10x18x36xbf16> to vector<10x16x36xbf16>
    %3 = vector.extract_strided_slice %1 {offsets = [0, 1, 0], sizes = [10, 16, 36], strides = [1, 1, 1]} : vector<10x18x36xbf16> to vector<10x16x36xbf16>
    %4 = vector.extract_strided_slice %1 {offsets = [0, 2, 0], sizes = [10, 16, 36], strides = [1, 1, 1]} : vector<10x18x36xbf16> to vector<10x16x36xbf16>
    %5 = tpu.concatenate %2, %3, %4 in 2 : vector<10x16x36xbf16>, vector<10x16x36xbf16>, vector<10x16x36xbf16> -> vector<10x16x108xbf16>
    %6 = vector.extract_strided_slice %5 {offsets = [0, 0, 0], sizes = [8, 16, 108], strides = [1, 1, 1]} : vector<10x16x108xbf16> to vector<8x16x108xbf16>
    %7 = vector.extract_strided_slice %5 {offsets = [1, 0, 0], sizes = [8, 16, 108], strides = [1, 1, 1]} : vector<10x16x108xbf16> to vector<8x16x108xbf16>
    %8 = vector.extract_strided_slice %5 {offsets = [2, 0, 0], sizes = [8, 16, 108], strides = [1, 1, 1]} : vector<10x16x108xbf16> to vector<8x16x108xbf16>
    %9 = tpu.concatenate %6, %7, %8 in 2 : vector<8x16x108xbf16>, vector<8x16x108xbf16>, vector<8x16x108xbf16> -> vector<8x16x324xbf16>
    %10 = vector.shape_cast %9 : vector<8x16x324xbf16> to vector<128x324xbf16>
    %c0_3 = arith.constant 0 : index
    %c0_4 = arith.constant 0 : index
    %11 = vector.load %arg3[%c0_3, %c0_4] : memref<324x128xbf16, #tpu.memory_space<vmem>>, vector<324x128xbf16>
    %cst = arith.constant dense<0.000000e+00> : vector<128x128xf32>
    %12 = tpu.matmul %10, %11, %cst {dimension_numbers = #tpu.dot_dimension_numbers<[1], [0], [0], [1], [0, 0, 1, 1], [], []>} : vector<128x324xbf16>, vector<324x128xbf16>, vector<128x128xf32> -> vector<128x128xf32>
    %c0_5 = arith.constant 0 : index
    %c0_6 = arith.constant 0 : index
    %13 = vector.load %arg4[%c0_5, %c0_6] : memref<1x128xf32, #tpu.memory_space<vmem>>, vector<1x128xf32>
    %14 = vector.broadcast %13 : vector<1x128xf32> to vector<128x128xf32>
    %15 = arith.addf %12, %14 : vector<128x128xf32>
    %16 = tpu.transpose %15, [1, 0] : vector<128x128xf32> -> vector<128x128xf32>
    %17 = vector.extract_strided_slice %16 {offsets = [0, 0], sizes = [32, 128], strides = [1, 1]} : vector<128x128xf32> to vector<32x128xf32>
    %18 = arith.negf %17 : vector<32x128xf32>
    %19 = math.exp %18 : vector<32x128xf32>
    %cst_7 = arith.constant 1.000000e+00 : f32
    %20 = vector.broadcast %cst_7 : f32 to vector<32x128xf32>
    %21 = arith.addf %20, %19 : vector<32x128xf32>
    %22 = arith.divf %20, %21 : vector<32x128xf32>
    %23 = vector.extract_strided_slice %16 {offsets = [32, 0], sizes = [32, 128], strides = [1, 1]} : vector<128x128xf32> to vector<32x128xf32>
    %24 = arith.negf %23 : vector<32x128xf32>
    %25 = math.exp %24 : vector<32x128xf32>
    %cst_8 = arith.constant 1.000000e+00 : f32
    %26 = vector.broadcast %cst_8 : f32 to vector<32x128xf32>
    %27 = arith.addf %26, %25 : vector<32x128xf32>
    %28 = arith.divf %26, %27 : vector<32x128xf32>
    %29 = vector.extract_strided_slice %16 {offsets = [64, 0], sizes = [32, 128], strides = [1, 1]} : vector<128x128xf32> to vector<32x128xf32>
    %30 = arith.negf %29 : vector<32x128xf32>
    %31 = math.exp %30 : vector<32x128xf32>
    %cst_9 = arith.constant 1.000000e+00 : f32
    %32 = vector.broadcast %cst_9 : f32 to vector<32x128xf32>
    %33 = arith.addf %32, %31 : vector<32x128xf32>
    %34 = arith.divf %32, %33 : vector<32x128xf32>
    %35 = vector.extract_strided_slice %16 {offsets = [96, 0], sizes = [32, 128], strides = [1, 1]} : vector<128x128xf32> to vector<32x128xf32>
    %36 = math.tanh %35 : vector<32x128xf32>
    %c0_10 = arith.constant 0 : index
    %c0_11 = arith.constant 0 : index
    %c0_12 = arith.constant 0 : index
    %37 = vector.load %arg5[%c0_10, %c0_11, %c0_12] : memref<1x32x128xf32, #tpu.memory_space<vmem>>, vector<1x32x128xf32>
    %38 = vector.shape_cast %37 : vector<1x32x128xf32> to vector<32x128xf32>
    %39 = arith.mulf %28, %38 : vector<32x128xf32>
    %40 = arith.mulf %22, %36 : vector<32x128xf32>
    %41 = arith.addf %39, %40 : vector<32x128xf32>
    %42 = math.tanh %41 : vector<32x128xf32>
    %43 = arith.mulf %34, %42 : vector<32x128xf32>
    %44 = vector.shape_cast %41 : vector<32x128xf32> to vector<1x32x128xf32>
    %c0_13 = arith.constant 0 : index
    %c0_14 = arith.constant 0 : index
    %c0_15 = arith.constant 0 : index
    %45 = vector.load %arg7[%c0_13, %c0_14, %c0_15] : memref<1x32x128xf32, #tpu.memory_space<vmem>>, vector<1x32x128xf32>
    tpu.vector_store %arg7[%c0_13, %c0_14, %c0_15], %44 {strides = array<i32>} : memref<1x32x128xf32, #tpu.memory_space<vmem>>, vector<1x32x128xf32>,
    %46 = vector.shape_cast %43 : vector<32x128xf32> to vector<1x32x128xf32>
    %c0_16 = arith.constant 0 : index
    %c0_17 = arith.constant 0 : index
    %c0_18 = arith.constant 0 : index
    %47 = vector.load %arg6[%c0_16, %c0_17, %c0_18] : memref<1x32x128xf32, #tpu.memory_space<vmem>>, vector<1x32x128xf32>
    tpu.vector_store %arg6[%c0_16, %c0_17, %c0_18], %46 {strides = array<i32>} : memref<1x32x128xf32, #tpu.memory_space<vmem>>, vector<1x32x128xf32>,
    return
  }
  func.func @transform_0(%arg0: i32, %arg1: i32) -> (i32, i32, i32, i32) {
    %c2_i32 = arith.constant 2 : i32
    %0 = arith.muli %arg0, %c2_i32 : i32
    %1 = arith.addi %0, %arg1 : i32
    %c0_i32 = arith.constant 0 : i32
    %c0_i32_0 = arith.constant 0 : i32
    %c0_i32_1 = arith.constant 0 : i32
    %c0_i32_2 = arith.constant 0 : i32
    return %1, %c0_i32, %c0_i32_0, %c0_i32_1 : i32, i32, i32, i32
  }
  func.func @transform_1(%arg0: i32, %arg1: i32) -> (i32, i32) {
    %c0_i32 = arith.constant 0 : i32
    %c0_i32_0 = arith.constant 0 : i32
    %c0_i32_1 = arith.constant 0 : i32
    return %c0_i32, %c0_i32_0 : i32, i32
  }
  func.func @transform_2(%arg0: i32, %arg1: i32) -> (i32, i32) {
    %c0_i32 = arith.constant 0 : i32
    %c0_i32_0 = arith.constant 0 : i32
    %c0_i32_1 = arith.constant 0 : i32
    return %c0_i32, %c0_i32_0 : i32, i32
  }
  func.func @transform_3(%arg0: i32, %arg1: i32) -> (i32, i32, i32) {
    %c0_i32 = arith.constant 0 : i32
    %c0_i32_0 = arith.constant 0 : i32
    return %arg0, %c0_i32, %arg1 : i32, i32, i32
  }
  func.func @transform_4(%arg0: i32, %arg1: i32) -> (i32, i32, i32) {
    %c0_i32 = arith.constant 0 : i32
    %c0_i32_0 = arith.constant 0 : i32
    return %arg0, %c0_i32, %arg1 : i32, i32, i32
  }
  func.func @transform_5(%arg0: i32, %arg1: i32) -> (i32, i32, i32) {
    %c0_i32 = arith.constant 0 : i32
    %c0_i32_0 = arith.constant 0 : i32
    return %arg0, %c0_i32, %arg1 : i32, i32, i32
  }
}

</mosaic_0001>

<bundles_post_ra>
// kernel: tpu_custom_call.1
= control target key start
LH: loop header
LB: loop body
LE: loop exit
PB: predicated region body
PF: predicated region fallthrough
CT: control target
= control target key end

     0   :  { %11 = vsyncpa [#allocation4], 0  ;;  %s2519_s0 = inlined_call_operand.vmem [shape: bf16[4,10,18,36], index: 0, kind: input, shape index: {}]   ;;  %s2520_s1 = inlined_call_operand.vmem [shape: bf16[324,128], index: 1, kind: input, shape index: {}]   ;;  %s2521_s2 = inlined_call_operand.vmem [shape: f32[1,128], index: 2, kind: input, shape index: {}]   ;;  %s2522_s3 = inlined_call_operand.vmem [shape: f32[2,32,256], index: 3, kind: input, shape index: {}]   ;;  %s2523_s4 = inlined_call_operand.hbm [shape: f32[2,32,256], index: 4, kind: output, shape index: {0}]   ;;  %s2524_s5 = inlined_call_operand.hbm [shape: f32[2,32,256], index: 5, kind: output, shape index: {1}]  }
   0x1   :  { %13 = vsyncpa [#allocation4 + $0x1], 0 }
   0x2   :  { %14 = vsyncpa [#allocation6], 0 }
   0x3   :  { %16 = vsyncpa [#allocation6 + $0x1], 0  ;;  %s2004_s18 = smov 0   ;;  %s2006_s19 = smov 0  }
   0x4   :  { %s2008_s20 = smov 0   ;;  %s2010_s21 = smov 0  }
   0x5   :  { %s2012_s22 = smov 0   ;;  %s2014_s23 = smov 0  }
   0x6   :  { %s2016_s24 = smov 0   ;;  %s2018_s25 = smov 0  }
   0x7 LB: > { %s1463_s26 = sadd.s32 4294967295, %s1963_s25   ;;  %s1464_s27 = sadd.s32 4294967294, %s1963_s25   ;;  %s1963_s25 = sphi %s2018_s25, %s22_s25   ;;  %s1959_s24 = sphi %s2016_s24, %s2539_s24   ;;  %s1955_s23 = sphi %s2014_s23, %s2538_s23   ;;  %s1951_s22 = sphi %s2012_s22, %s2537_s22   ;;  %s1947_s21 = sphi %s2010_s21, %s2536_s21   ;;  %s1943_s20 = sphi %s2008_s20, %s2535_s20   ;;  %s1939_s19 = sphi %s2006_s19, %s2534_s19   ;;  %s1935_s18 = sphi %s2004_s18, %s2533_s18  }
   0x8   : > { %s31_s28 = sadd.s32 1, %s1955_s23  ;;  %s34_s29 = sadd.s32 1, %s1959_s24 }
   0x9   : > { %p32_p0 = scmp.ge.s32.totalorder %s31_s28, 2  ;;  %p122_p1 = scmp.ne.s32.totalorder %s1943_s20, %s1939_s19 }
   0xa   : > { %p123_p2 = scmp.eq.s32.totalorder %s1963_s25, 0  ;;  %p154_p5 = scmp.eq.s32.totalorder %s1463_s26, 3 }
   0xb   : > { %s2541_s28 = smov (%p32_p0, %s31_s28), 0  ;;  %s2543_s29 = smov (!%p32_p0, %s34_s29), %s1959_s24 }
   0xc   : > { %s111_s30 = ssub.s32 %s1955_s23, %s2541_s28  ;;  %p2056_p3 = por %p123_p2, %p122_p1 }
   0xd   : > { %p36_p4 = scmp.ge.s32.totalorder %s2543_s29, 2  ;;  %p159_p6 = scmp.ne.s32.totalorder %s1939_s19, %s1935_s18 }
   0xe   : > { %p160_p7 = scmp.eq.s32.totalorder %s1464_s27, 3  ;;  %p2064_p8 = por %p154_p5, %p122_p1 }
   0xf   : > { %s2545_s29 = smov (%p36_p4, %s2543_s29), 0  ;;  %s115_s11 = sadd.s32 1, %s1943_s20 }
  0x10   : > { %p2068_p9 = por %p160_p7, %p159_p6  ;;  %s110_s9 = ssub.s32 %s1959_s24, %s2545_s29 }
  0x11   : > { %s112_s10 = sor.u32 %s111_s30, %s110_s9  ;;  %p1468_p11 = scmp.ge.s32.totalorder %s1963_s25, 4 }
  0x12   : > { %p113_p10 = scmp.eq.s32.totalorder %s112_s10, 0 }
  0x13   : > { %210 = sbr.rel (%p1468_p11) target bundleno = 32 (0x20), region = 24 }
  0x14   : > { %s2076_s12 = scalar_select %p113_p10, %s1943_s20, %s115_s11  }
  0x18   : > { %225 = sbr.rel (!%p2056_p3) target bundleno = 32 (0x20), region = 32  ;;  %s227_s13 = sand.u32 (%p2056_p3), 1, %s1943_s20  }
  0x19   : > { %s1470_s14 = sshll.u32 (%p2056_p3), %s1959_s24, 3  ;;  %s1469_s15 = sshll.u32 (%p2056_p3), %s227_s13, 5 }
  0x1a   : > { %s231_s16 = sadd.s32 (%p2056_p3), %s1955_s23, %s1470_s14  ;;  %s229_s9 = scalar_lea.vmem (%p2056_p3), [#allocation2], %s1469_s15 }
  0x1b   : > { %s1471_s17 = sshll.u32 (%p2056_p3), %s231_s16, 3 }
  0x1c   : > { %s233_s30 = scalar_lea.vmem (%p2056_p3), %s2522_s3, %s1471_s17 }
  0x1d   : > { %v268_v0 = vld [vmem:[%s233_s30] sm:$0xff]  ;;  %v270_v1 = vld [vmem:[%s233_s30 + $0x10] sm:$0xff] }
  0x1e   : > { %v272_v2 = vld [vmem:[%s233_s30 + $0x20] sm:$0xff]  ;;  %269 = vst [vmem:[%s229_s9] sm:$0xff] %v268_v0  ;;  %271 = vst [vmem:[%s229_s9 + $0x8] sm:$0xff] %v270_v1  ;;  %v274_v3 = vld [vmem:[%s233_s30 + $0x30] sm:$0xff] }
  0x1f   : > { %273 = vst [vmem:[%s229_s9 + $0x10] sm:$0xff] %v272_v2  ;;  %275 = vst [vmem:[%s229_s9 + $0x18] sm:$0xff] %v274_v3 }
  0x20 PF: > { %p1472_p12 = scmp.ge.s32.totalorder %s1963_s25, 1  ;;  %p280_p13 = scmp.lt.s32.totalorder %s1963_s25, 5 }
  0x22   : > { %p281_p0 = pnand %p1472_p12, %p280_p13 }
  0x23   : > { %s1476_s6 = sshll.u32 (!%p281_p0), %s1951_s22, 1  ;;  %s1965_s16 = smov (!%p281_p0), 72  }
  0x24   : > { %284 = sbr.rel (%p281_p0) target bundleno = 736 (0x2e0), region = 70  ;;  %s327_s10 = sadd.s32 (!%p281_p0), %s1947_s21, %s1476_s6 }
  0x25   : > { %p328_p1 = scmp.lt.s32.totalorder (!%p281_p0), %s327_s10, 3  ;;  %s1966_s17 = smov (!%p281_p0), 36  }
  0x26   : > { %s1968_s26 = smov (!%p281_p0), 88   ;;  %s2397_s30 = sand.u32 (!%p281_p0), 1, %s1939_s19  }
  0x27   : > { %s2400_s9 = sshll.u32 (!%p281_p0), %s2397_s30, 5  ;;  %s1969_s27 = smov (!%p281_p0), [#allocation5]  }
  0x28   : > { %s2403_s6 = scalar_lea.vmem (!%p281_p0), [#allocation2], %s2400_s9 }
  0x29   : > { %s2547_s10 = smov (!%p328_p1, %s327_s10), 3  ;;  %vm446_vm0 = vsmask.f32 7424  ;;  %vm587_vm1 = vcmask 1046528   ;;  %vm959_vm2 = vcmask 1041408   ;;  %vm638_vm3 = vcmask 293888  }
  0x2a   : > { %s1652_s11 = smul.u32 120, %s2547_s10  ;;  %vm659_vm4 = vcmask 588800   ;;  %vm942_vm5 = vcmask 556032   ;;  %vm746_vm6 = vcmask 719872   ;;  %vm721_vm7 = vcmask 883712   ;;  %s2408_s10 = scalar_lea.vmem [#allocation5], %s2400_s9 }
  0x2c   : > { %s2094_s15 = scalar_lea.vmem %s2519_s0, %s1652_s11  ;;  %s1542_s11 = sshll.u32 %s1951_s22, 3 }
  0x2d   : > { %v2097_v4 = vld [vmem:[%s2094_s15 + $0xc] sm:$0xff]   ;;  %v1737_v5 = vld [vmem:[%s2094_s15 + $0x14] ss:$0 sps:$4 sm:$0x11]   ;;  %v2101_v6 = vld [vmem:[%s2094_s15 + $0x18] sm:$0xff]   ;;  %s2415_s13 = sadd.s32 %s1947_s21, %s1542_s11 }
  0x2e   : > { %v460_v7 = vshrl.u32 %v2097_v4, 16  ;;  %v462_v8 = vshll.u32 %v2097_v4, 16  ;;  %v467_v9 = vshll.u32 %v1737_v5, 16  ;;  %v591_v10 = vrot.slane %v2097_v4, 1  ;;  %v2111_v18 = vld [vmem:[%s2094_s15 + $0x24] sm:$0xff]   ;;  %v2115_v23 = vld [vmem:[%s2094_s15 + $0x30] sm:$0xff]  }
  0x2f   : > { %v592_v11 = vrot.slane %v1737_v5, 1  ;;  %v1739_v12 = vld [vmem:[%s2094_s15 + $0x20] ss:$0 sps:$4 sm:$0x11]   ;;  %v472_v13 = vshrl.u32 %v2101_v6, 16  ;;  %v474_v14 = vshll.u32 %v2101_v6, 16 }
  0x30   : > { %v464_v15 = vrot.slane %v462_v8, 1  ;;  %v469_v16 = vrot.slane %v467_v9, 1  ;;  %v594_v17 = vrot.slane %v2101_v6, 1  ;;  %v479_v21 = vshll.u32 %v1739_v12, 16  ;;  %v2125_v36 = vld [vmem:[%s2094_s15 + $0x3c] sm:$0xff]   ;;  %v2136_v45 = vld [vmem:[%s2094_s15 + $0x48] sm:$0xff]  }
  0x31   : > { %v593_v19 = vsel %vm587_vm1, %v591_v10, %v592_v11  ;;  %v476_v20 = vrot.slane %v474_v14, 1  ;;  %v595_v22 = vrot.slane %v1739_v12, 1  ;;  %v1741_v25 = vld [vmem:[%s2094_s15 + $0x2c] ss:$0 sps:$4 sm:$0x11]   ;;  %v484_v26 = vshrl.u32 %v2111_v18, 16 }
  0x32   : > { %v465_v24 = vor.u32 %v464_v15, %v460_v7  ;;  %620 = vrot.lane.b32.xlu1 %v593_v19, %s1965_s16  ;;  %v486_v27 = vshll.u32 %v2111_v18, 16  ;;  %v597_v28 = vrot.slane %v2111_v18, 1  ;;  %v481_v30 = vrot.slane %v479_v21, 1  ;;  %v1743_v37 = vld [vmem:[%s2094_s15 + $0x38] ss:$0 sps:$4 sm:$0x11]  }
  0x33   : > { %v477_v29 = vor.u32 %v476_v20, %v472_v13  ;;  %v596_v31 = vsel %vm587_vm1, %v594_v17, %v595_v22  ;;  %v491_v34 = vshll.u32 %v1741_v25, 16  ;;  %v598_v35 = vrot.slane %v1741_v25, 1  ;;  %v1745_v50 = vld [vmem:[%s2094_s15 + $0x44] ss:$0 sps:$4 sm:$0x11]   ;;  %v2150_v1 = vld [vmem:[%s2094_s15 + $0x54] sm:$0xff]  }
  0x34   : > { %v470_v32 = vsel %vm446_vm0, %v465_v24, %v469_v16  ;;  %v488_v33 = vrot.slane %v486_v27, 1  ;;  %v496_v38 = vshrl.u32 %v2115_v23, 16  ;;  %v498_v39 = vshll.u32 %v2115_v23, 16  ;;  %v1747_v58 = vld [vmem:[%s2094_s15 + $0x50] ss:$0 sps:$4 sm:$0x11]  }
  0x35   : > { %569 = vrot.lane.b32.xlu0 %v470_v32, %s1966_s17  ;;  %v600_v40 = vrot.slane %v2115_v23, 1  ;;  %v482_v41 = vsel %vm446_vm0, %v477_v29, %v481_v30  ;;  %v493_v43 = vrot.slane %v491_v34, 1  ;;  %v599_v44 = vsel %vm587_vm1, %v597_v28, %v598_v35  ;;  %v1749_v5 = vld [vmem:[%s2094_s15 + $0x5c] ss:$0 sps:$4 sm:$0x11]   ;;  %v2160_v12 = vld [vmem:[%s2094_s15 + $0x60] sm:$0xff]  }
  0x36   : > { %622 = vrot.lane.b32.xlu1 %v596_v31, %s1965_s16  ;;  %v489_v42 = vor.u32 %v488_v33, %v484_v26  ;;  %v500_v46 = vrot.slane %v498_v39, 1  ;;  %v503_v47 = vshll.u32 %v1743_v37, 16  ;;  %v601_v48 = vrot.slane %v1743_v37, 1  ;;  %v1751_v17 = vld [vmem:[%s2094_s15 + $0x68] ss:$0 sps:$4 sm:$0x11]  }
  0x37   : > { %v510_v49 = vshll.u32 %v2125_v36, 16  ;;  %v508_v52 = vshrl.u32 %v2125_v36, 16  ;;  %v515_v56 = vshll.u32 %v1745_v50, 16  ;;  %v603_v57 = vrot.slane %v2125_v36, 1  ;;  %v2166_v19 = vld [vmem:[%s2094_s15 + $0x6c] sm:$0xff]   ;;  %s2525_s22 = sshll.u32 %s2415_s13, 7 }
  0x38   : > { %v494_v51 = vsel %vm446_vm0, %v489_v42, %v493_v43  ;;  %v501_v54 = vor.u32 %v500_v46, %v496_v38  ;;  %v505_v55 = vrot.slane %v503_v47, 1  ;;  %v602_v59 = vsel %vm587_vm1, %v600_v40, %v601_v48  ;;  %v1753_v27 = vld [vmem:[%s2094_s15 + $0x74] ss:$0 sps:$4 sm:$0x11]   ;;  %v2181_v38 = vld [vmem:[%s2094_s15] sm:$0xff]  }
  0x39   : > { %571 = vrot.lane.b32.xlu0 %v482_v41, %s1966_s17  ;;  %v512_v53 = vrot.slane %v510_v49, 1  ;;  %v604_v60 = vrot.slane %v1745_v50, 1  ;;  %v522_v61 = vshll.u32 %v2136_v45, 16  ;;  %v517_v62 = vrot.slane %v515_v56, 1  ;;  %v1756_v49 = vld [vmem:[%s2520_s1 + $0x78] sm:$0xff]  }
  0x3a   : > { %624 = vrot.lane.b32.xlu1 %v599_v44, %s1965_s16  ;;  %v520_v63 = vshrl.u32 %v2136_v45, 16  ;;  %v527_v0 = vshll.u32 %v1747_v58, 16  ;;  %v506_v7 = vsel %vm446_vm0, %v501_v54, %v505_v55  ;;  %v606_v9 = vrot.slane %v2136_v45, 1  ;;  %v1755_v43 = vld [vmem:[%s2094_s15 + $0x8] ss:$0 sps:$4 sm:$0x11]   ;;  %1548 = vmatprep.subr.bf16.mxu0 %v1756_v49 }
  0x3b   : > { %v513_v2 = vor.u32 %v512_v53, %v508_v52  ;;  %v524_v3 = vrot.slane %v522_v61, 1  ;;  %v605_v8 = vsel %vm587_vm1, %v603_v57, %v604_v60  ;;  %v607_v10 = vrot.slane %v1747_v58, 1  ;;  %v1757_v50 = vld [vmem:[%s2520_s1 + $0x38] sm:$0xff]   ;;  %v1764_v55 = vld [vmem:[%s2520_s1 + $0xa0] ss:$0 sps:$4 sm:$0x33]  }
  0x3c   : > { %v534_v11 = vshll.u32 %v2150_v1, 16  ;;  %v529_v13 = vrot.slane %v527_v0, 1  ;;  %v539_v14 = vshll.u32 %v1749_v5, 16  ;;  %v532_v20 = vshrl.u32 %v2150_v1, 16  ;;  %1549 = vmatpush3.bf16.msra.mxu0 %v1757_v50  ;;  %v1759_v60 = vld [vmem:[%s2520_s1 + $0x30] sm:$0xff]   ;;  %v1760_v0 = vld [vmem:[%s2520_s1 + $0x68] sm:$0xff]   ;;  %1651 = vmatprep.subr.msk.bf16.mxu1 %vm959_vm2, %v1764_v55 }
  0x3d   : > { %573 = vrot.lane.b32.xlu0 %v494_v51, %s1966_s17  ;;  %v518_v15 = vsel %vm446_vm0, %v513_v2, %v517_v62  ;;  %v525_v16 = vor.u32 %v524_v3, %v520_v63  ;;  %v609_v22 = vrot.slane %v2150_v1, 1  ;;  %v546_v24 = vshll.u32 %v2160_v12, 16  ;;  %v1758_v51 = vld [vmem:[%s2520_s1 + $0x70] sm:$0xff]   ;;  %s1967_s15 = smov 108  }
  0x3e   : > { %626 = vrot.lane.b32.xlu1 %v602_v59, %s1965_s16  ;;  %v536_v21 = vrot.slane %v534_v11, 1  ;;  %v608_v25 = vsel %vm587_vm1, %v606_v9, %v607_v10  ;;  %v610_v26 = vrot.slane %v1749_v5, 1  ;;  %v541_v28 = vrot.slane %v539_v14, 1  ;;  %1550 = vmatprep.subr.bf16.mxu0 %v1758_v51  ;;  %v1762_v9 = vld [vmem:[%s2520_s1 + $0x60] sm:$0xff]   ;;  %v1770_v11 = vld [vmem:[%s2520_s1 + $0x90] sm:$0xff]  }
  0x3f   : > { %v558_v29 = vshll.u32 %v2166_v19, 16  ;;  %v530_v30 = vsel %vm446_vm0, %v525_v16, %v529_v13  ;;  %v544_v31 = vshrl.u32 %v2160_v12, 16  ;;  %v551_v32 = vshll.u32 %v1751_v17, 16  ;;  %v1763_v16 = vld [vmem:[%s2520_s1 + $0x20] sm:$0xff]  }
  0x40   : > { %v537_v33 = vor.u32 %v536_v21, %v532_v20  ;;  %v548_v34 = vrot.slane %v546_v24, 1  ;;  %v612_v35 = vrot.slane %v2160_v12, 1  ;;  %v613_v37 = vrot.slane %v1751_v17, 1  ;;  %1551 = vmatpush3.bf16.msra.mxu0 %v1759_v60  ;;  %v1765_v20 = vld [vmem:[%s2520_s1 + $0x58] sm:$0xff]   ;;  %v1769_v24 = vld [vmem:[%s2520_s1 + $0x10] sm:$0xff]  }
  0x41   : > { %575 = vrot.lane.b32.xlu0 %v506_v7, %s1966_s17  ;;  %v611_v39 = vsel %vm587_vm1, %v609_v22, %v610_v26  ;;  %v556_v40 = vshrl.u32 %v2166_v19, 16  ;;  %v563_v41 = vshll.u32 %v1753_v27, 16  ;;  %v560_v42 = vrot.slane %v558_v29, 1  ;;  %v1761_v7 = vld [vmem:[%s2520_s1 + $0x28] sm:$0xff]   ;;  %1552 = vmatprep.subr.bf16.mxu0 %v1760_v0  ;;  %v1766_v21 = vld [vmem:[%s2520_s1 + $0x18] sm:$0xff]   ;;  %v1768_v22 = vld [vmem:[%s2520_s1 + $0x50] sm:$0xff]  }
  0x42   : > { %628 = vrot.lane.b32.xlu1 %v605_v8, %s1965_s16  ;;  %v542_v44 = vsel %vm446_vm0, %v537_v33, %v541_v28  ;;  %v549_v46 = vor.u32 %v548_v34, %v544_v31  ;;  %v553_v47 = vrot.slane %v551_v32, 1  ;;  %v450_v48 = vshll.u32 %v2181_v38, 16  ;;  %v1767_v8 = vld [vmem:[%s2520_s1 + $0x98] sm:$0xff]   ;;  %v1772_v26 = vld [vmem:[%s2520_s1 + $0x8] sm:$0xff]   ;;  %v1774_v28 = vld [vmem:[%s2520_s1 + $0x40] sm:$0xff]  }
  0x43   : > { %v614_v52 = vsel %vm587_vm1, %v612_v35, %v613_v37  ;;  %v615_v53 = vrot.slane %v2166_v19, 1  ;;  %v616_v54 = vrot.slane %v1753_v27, 1  ;;  %v561_v56 = vor.u32 %v560_v42, %v556_v40  ;;  %v1773_v27 = vld [vmem:[%s2520_s1 + $0x88] sm:$0xff]   ;;  %v1775_v29 = vld [vmem:[%s2520_s1] sm:$0xff]  }
  0x44   : > { %v565_v57 = vrot.slane %v563_v41, 1  ;;  %v448_v58 = vshrl.u32 %v2181_v38, 16  ;;  %v455_v59 = vshll.u32 %v1755_v43, 16  ;;  %v554_v61 = vsel %vm446_vm0, %v549_v46, %v553_v47  ;;  %1553 = vmatpush3.bf16.msra.mxu0 %v1761_v7 }
  0x45   : > { %577 = vrot.lane.b32.xlu0 %v518_v15, %s1966_s17  ;;  %v452_v62 = vrot.slane %v450_v48, 1  ;;  %v588_v63 = vrot.slane %v2181_v38, 1  ;;  %v961_v2 = vsel %vm959_vm2, %v1764_v55, 0  ;;  %v617_v3 = vsel %vm587_vm1, %v615_v53, %v616_v54  ;;  %1554 = vmatprep.subr.bf16.mxu0 %v1762_v9 }
  0x46   : > { %630 = vrot.lane.b32.xlu1 %v608_v25, %s1965_s16  ;;  %v589_v5 = vrot.slane %v1755_v43, 1  ;;  %1626 = vmatpush3.bf16.msra.mxu1 %v961_v2  ;;  %v457_v10 = vrot.slane %v455_v59, 1  ;;  %v566_v13 = vsel %vm446_vm0, %v561_v56, %v565_v57  ;;  %v1771_v25 = vld [vmem:[%s2520_s1 + $0x48] sm:$0xff]  }
  0x47   : > { %v453_v14 = vor.u32 %v452_v62, %v448_v58  ;;  %1627 = vmatprep.subr.bf16.mxu1 %v1767_v8 }
  0x48   : > { %v590_v15 = vsel %vm587_vm1, %v588_v63, %v589_v5  ;;  %1555 = vmatpush3.bf16.msra.mxu0 %v1763_v16 }
  0x49   : > { %579 = vrot.lane.b32.xlu0 %v530_v30, %s1966_s17  ;;  %v458_v17 = vsel %vm446_vm0, %v453_v14, %v457_v10  ;;  %1556 = vmatprep.subr.bf16.mxu0 %v1765_v20  ;;  %v1776_v30 = vld [vmem:[%s2520_s1 + $0x80] sm:$0xff]  }
  0x4a   : > { %632 = vrot.lane.b32.xlu1 %v611_v39, %s1965_s16  ;;  %1628 = vmatpush3.bf16.msra.mxu1 %v1767_v8 }
  0x4b   : > { %1629 = vmatprep.subr.bf16.mxu1 %v1770_v11 }
  0x4c   : > { %1557 = vmatpush3.bf16.msra.mxu0 %v1766_v21 }
  0x4d   : > { %581 = vrot.lane.b32.xlu0 %v542_v44, %s1966_s17  ;;  %1558 = vmatprep.subr.bf16.mxu0 %v1768_v22 }
  0x4e   : > { %634 = vrot.lane.b32.xlu1 %v614_v52, %s1965_s16  ;;  %1630 = vmatpush3.bf16.msra.mxu1 %v1770_v11 }
  0x4f   : > { %1631 = vmatprep.subr.bf16.mxu1 %v1773_v27 }
  0x50   : > { %1559 = vmatpush3.bf16.msra.mxu0 %v1769_v24 }
  0x51   : > { %583 = vrot.lane.b32.xlu0 %v554_v61, %s1966_s17  ;;  %1560 = vmatprep.subr.bf16.mxu0 %v1771_v25 }
  0x52   : > { %636 = vrot.lane.b32.xlu1 %v617_v3, %s1965_s16  ;;  %1632 = vmatpush3.bf16.msra.mxu1 %v1773_v27 }
  0x53   : > { %1633 = vmatprep.subr.bf16.mxu1 %v1776_v30 }
  0x54   : > { %1561 = vmatpush3.bf16.msra.mxu0 %v1772_v26 }
  0x55   : > { %585 = vrot.lane.b32.xlu0 %v566_v13, %s1966_s17  ;;  %1562 = vmatprep.subr.bf16.mxu0 %v1774_v28 }
  0x56   : > { %618 = vrot.lane.b32.xlu1 %v590_v15, %s1965_s16  ;;  %1634 = vmatpush3.bf16.msra.mxu1 %v1776_v30  ;;  %s1334_s16 = sshll.u32 %s2408_s10, 4  ;;  %s2428_s16 = int_to_ptr.vmem [resolvable:$true] %s1334_s16 }
  0x58   : > { %1563 = vmatpush3.bf16.msra.mxu0 %v1775_v29 }
  0x59   : > { %567 = vrot.lane.b32.xlu0 %v458_v17, %s1966_s17  ;;  %s1841_s17 = scalar_lea.vmem %s2428_s16, 512 }
  0x5a   : > { %p1842_p2 = scmp.ne.s32.totalorder %s2428_s16, %s1841_s17 }
  0x5c   : > { %p1843_p3 = pnand %p1842_p2, %p2064_p8 }
  0x5e   : > { %p1844_p4 = pneg %p1843_p3 }
  0xa4   : > { %v621_v31 = vpop.permute.xlu1 %620 }
  0xa7   : > { %v570_v32 = vpop.permute.xlu0 %569 }
  0xa8   : > { %v642_v33 = vsel %vm638_vm3, %v2097_v4, %v570_v32  ;;  %v623_v34 = vpop.permute.xlu1 %622 }
  0xa9   : > { %v2274_v35 = vsel %vm659_vm4, %v642_v33, %v621_v31 }
  0xaa   : > { %688 = vrot.lane.b32.xlu0 %v2274_v35, %s1967_s15 }
  0xab   : > { %v572_v37 = vpop.permute.xlu0 %571 }
  0xac   : > { %v644_v39 = vsel %vm638_vm3, %v2101_v6, %v572_v37  ;;  %v625_v40 = vpop.permute.xlu1 %624 }
  0xad   : > { %v2281_v41 = vsel %vm659_vm4, %v644_v39, %v623_v34 }
  0xae   : > { %705 = vrot.lane.b32.xlu1 %v2281_v41, %s1968_s26  ;;  %690 = vrot.lane.b32.xlu0 %v2281_v41, %s1967_s15 }
  0xaf   : > { %v574_v4 = vpop.permute.xlu0 %573 }
  0xb0   : > { %v646_v42 = vsel %vm638_vm3, %v2111_v18, %v574_v4  ;;  %v627_v43 = vpop.permute.xlu1 %626 }
  0xb1   : > { %v2290_v44 = vsel %vm659_vm4, %v646_v42, %v625_v40 }
  0xb2   : > { %707 = vrot.lane.b32.xlu1 %v2290_v44, %s1968_s26  ;;  %692 = vrot.lane.b32.xlu0 %v2290_v44, %s1967_s15 }
  0xb3   : > { %v576_v6 = vpop.permute.xlu0 %575 }
  0xb4   : > { %v648_v46 = vsel %vm638_vm3, %v2115_v23, %v576_v6  ;;  %v629_v47 = vpop.permute.xlu1 %628 }
  0xb5   : > { %v2299_v48 = vsel %vm659_vm4, %v648_v46, %v627_v43  ;;  %v2378_v43 = vld [vmem:[%s2521_s2] ss:$0 sm:$0xff] }
  0xb6   : > { %709 = vrot.lane.b32.xlu1 %v2299_v48, %s1968_s26  ;;  %694 = vrot.lane.b32.xlu0 %v2299_v48, %s1967_s15 }
  0xb7   : > { %v578_v18 = vpop.permute.xlu0 %577 }
  0xb8   : > { %v650_v49 = vsel %vm638_vm3, %v2125_v36, %v578_v18  ;;  %v631_v50 = vpop.permute.xlu1 %630 }
  0xb9   : > { %v2308_v51 = vsel %vm659_vm4, %v650_v49, %v629_v47 }
  0xba   : > { %696 = vrot.lane.b32.xlu0 %v2308_v51, %s1967_s15  ;;  %711 = vrot.lane.b32.xlu1 %v2308_v51, %s1968_s26 }
  0xbb   : > { %v580_v23 = vpop.permute.xlu0 %579 }
  0xbc   : > { %v652_v52 = vsel %vm638_vm3, %v2136_v45, %v580_v23  ;;  %v633_v53 = vpop.permute.xlu1 %632 }
  0xbd   : > { %v2317_v54 = vsel %vm659_vm4, %v652_v52, %v631_v50 }
  0xbe   : > { %698 = vrot.lane.b32.xlu0 %v2317_v54, %s1967_s15  ;;  %713 = vrot.lane.b32.xlu1 %v2317_v54, %s1968_s26 }
  0xbf   : > { %v582_v36 = vpop.permute.xlu0 %581 }
  0xc0   : > { %v654_v55 = vsel %vm638_vm3, %v2150_v1, %v582_v36  ;;  %v635_v45 = vpop.permute.xlu1 %634 }
  0xc1   : > { %v2326_v56 = vsel %vm659_vm4, %v654_v55, %v633_v53 }
  0xc2   : > { %700 = vrot.lane.b32.xlu0 %v2326_v56, %s1967_s15  ;;  %715 = vrot.lane.b32.xlu1 %v2326_v56, %s1968_s26 }
  0xc3   : > { %v584_v57 = vpop.permute.xlu0 %583 }
  0xc4   : > { %v656_v58 = vsel %vm638_vm3, %v2160_v12, %v584_v57  ;;  %v637_v1 = vpop.permute.xlu1 %636 }
  0xc5   : > { %v677_v59 = vsel %vm659_vm4, %v656_v58, %v635_v45 }
  0xc6   : > { %702 = vrot.lane.b32.xlu0 %v677_v59, %s1967_s15  ;;  %717 = vrot.lane.b32.xlu1 %v677_v59, %s1968_s26  ;;  %s2426_s15 = scalar_lea.hbm %s2524_s5, %s2525_s22 }
  0xc7   : > { %v586_v60 = vpop.permute.xlu0 %585 }
  0xc8   : > { %v658_v61 = vsel %vm638_vm3, %v2166_v19, %v586_v60  ;;  %v619_v63 = vpop.permute.xlu1 %618 }
  0xc9   : > { %v679_v62 = vsel %vm659_vm4, %v658_v61, %v637_v1 }
  0xca   : > { %719 = vrot.lane.b32.xlu1 %v679_v62, %s1968_s26 }
  0xcb   : > { %v568_v0 = vpop.permute.xlu0 %567 }
  0xcc   : > { %v640_v12 = vsel %vm638_vm3, %v2181_v38, %v568_v0 }
  0xcd   : > { %v661_v2 = vsel %vm659_vm4, %v640_v12, %v619_v63 }
 0x11c   : > { %v689_v3 = vpop.permute.xlu0 %688 }
 0x11d   : > { %v723_v7 = vsel %vm721_vm7, %v661_v2, %v689_v3 }
 0x120   : > { %v706_v5 = vpop.permute.xlu1 %705  ;;  %v691_v8 = vpop.permute.xlu0 %690 }
 0x121   : > { %1635 = vmatprep.mubr.msk.bf16.mxu1 %vm942_vm5, %v706_v5  ;;  %v748_v19 = vsel %vm746_vm6, %v689_v3, %v706_v5  ;;  %v726_v13 = vsel %vm721_vm7, %v2274_v35, %v691_v8 }
 0x122   : > { %995 = vmatprep.mubr.bf16.mxu0 %v748_v19 }
 0x123   : > { %996 = vmatmul.mubr.bf16.vlgmr.msra.gmra.mxu0 %v723_v7 }
 0x124   : > { %v708_v9 = vpop.permute.xlu1 %707  ;;  %v693_v11 = vpop.permute.xlu0 %692 }
 0x125   : > { %1636 = vmatmul.mubr.msk.bf16.vlgmr.msra.gmra.mxu1 %vm942_vm5, %v708_v9  ;;  %v751_v38 = vsel %vm746_vm6, %v691_v8, %v708_v9  ;;  %v729_v20 = vsel %vm721_vm7, %v2281_v41, %v693_v11 }
 0x126   : > { %1003 = vmatprep.mubr.bf16.mxu0 %v751_v38 }
 0x128   : > { %v710_v10 = vpop.permute.xlu1 %709  ;;  %v695_v17 = vpop.permute.xlu0 %694 }
 0x129   : > { %1639 = vmatprep.mubr.msk.bf16.mxu1 %vm942_vm5, %v710_v10  ;;  %v754_v14 = vsel %vm746_vm6, %v693_v11, %v710_v10  ;;  %v732_v26 = vsel %vm721_vm7, %v2290_v44, %v695_v17 }
 0x12b   : > { %1004 = vmatmul.mubr.bf16.gmra.mxu0 %v726_v13 }
 0x12c   : > { %1011 = vmatprep.mubr.bf16.mxu0 %v754_v14  ;;  %v712_v15 = vpop.permute.xlu1 %711  ;;  %v697_v25 = vpop.permute.xlu0 %696 }
 0x12d   : > { %1640 = vmatmul.mubr.msk.bf16.gmra.mxu1 %vm942_vm5, %v712_v15  ;;  %v757_v21 = vsel %vm746_vm6, %v695_v17, %v712_v15  ;;  %v735_v30 = vsel %vm721_vm7, %v2299_v48, %v697_v25 }
 0x130   : > { %v714_v16 = vpop.permute.xlu1 %713  ;;  %v699_v29 = vpop.permute.xlu0 %698 }
 0x131   : > { %1643 = vmatprep.mubr.msk.bf16.mxu1 %vm942_vm5, %v714_v16  ;;  %v760_v27 = vsel %vm746_vm6, %v697_v25, %v714_v16  ;;  %v738_v33 = vsel %vm721_vm7, %v2308_v51, %v699_v29 }
 0x133   : > { %1012 = vmatmul.mubr.bf16.gmra.mxu0 %v729_v20 }
 0x134   : > { %1019 = vmatprep.mubr.bf16.mxu0 %v757_v21  ;;  %v716_v22 = vpop.permute.xlu1 %715  ;;  %v701_v32 = vpop.permute.xlu0 %700 }
 0x135   : > { %1644 = vmatmul.mubr.msk.bf16.gmra.mxu1 %vm942_vm5, %v716_v22  ;;  %v763_v31 = vsel %vm746_vm6, %v699_v29, %v716_v22  ;;  %v741_v37 = vsel %vm721_vm7, %v2317_v54, %v701_v32 }
 0x138   : > { %v718_v24 = vpop.permute.xlu1 %717  ;;  %v703_v35 = vpop.permute.xlu0 %702 }
 0x139   : > { %1647 = vmatprep.mubr.msk.bf16.mxu1 %vm942_vm5, %v718_v24  ;;  %v766_v34 = vsel %vm746_vm6, %v701_v32, %v718_v24  ;;  %v744_v40 = vsel %vm721_vm7, %v2326_v56, %v703_v35 }
 0x13b   : > { %1020 = vmatmul.mubr.bf16.gmra.mxu0 %v732_v26 }
 0x13c   : > { %1027 = vmatprep.mubr.bf16.mxu0 %v760_v27  ;;  %v720_v28 = vpop.permute.xlu1 %719 }
 0x13d   : > { %1648 = vmatmul.mubr.msk.bf16.gmra.mxu1 %vm942_vm5, %v720_v28  ;;  %v769_v39 = vsel %vm746_vm6, %v703_v35, %v720_v28 }
 0x143   : > { %1028 = vmatmul.mubr.bf16.gmra.mxu0 %v735_v30 }
 0x144   : > { %1035 = vmatprep.mubr.bf16.mxu0 %v763_v31 }
 0x14b   : > { %1036 = vmatmul.mubr.bf16.gmra.mxu0 %v738_v33 }
 0x14c   : > { %1043 = vmatprep.mubr.bf16.mxu0 %v766_v34 }
 0x153   : > { %1044 = vmatmul.mubr.bf16.gmra.mxu0 %v741_v37 }
 0x154   : > { %1051 = vmatprep.mubr.bf16.mxu0 %v769_v39 }
 0x15b   : > { %1052 = vmatmul.mubr.bf16.gmra.mxu0 %v744_v40 }
 0x1e3   : > { %v1564_v41 = vpop.f32.mrf.mxu0 }
 0x1e5   : > { %v1565_v4 = vpop.f32.mrf.mxu0  ;;  %v1637_v42 = vpop.f32.mrf.mxu1 }
 0x1e6   : > { %v1566_v44 = vadd.f32 %v1565_v4, %v1564_v41 }
 0x1e7   : > { %v1567_v6 = vpop.f32.mrf.mxu0  ;;  %v1094_v46 = vpop.f32.mrf.mxu1 }
 0x1e8   : > { %v998_v47 = vadd.f32 %v1566_v44, %v2378_v43 }
 0x1e9   : > { %v1568_v48 = vpop.f32.mrf.mxu0  ;;  %v1638_v18 = vpop.f32.mrf.mxu1 }
 0x1ea   : > { %v1095_v49 = vadd.f32 %v1094_v46, %v998_v47  ;;  %v1569_v50 = vadd.f32 %v1568_v48, %v1567_v6 }
 0x1eb   : > { %v1570_v51 = vpop.f32.mrf.mxu0  ;;  %v1097_v52 = vpop.f32.mrf.mxu1 }
 0x1ec   : > { %v1001_v23 = vadd.f32 %v1569_v50, %v2378_v43  ;;  %1157 = vxpose.xlu0.b32.start [1/16] %v1095_v49, 128 }
 0x1ed   : > { %v1571_v53 = vpop.f32.mrf.mxu0  ;;  %v1641_v57 = vpop.f32.mrf.mxu1 }
 0x1ee   : > { %v1098_v54 = vadd.f32 %v1097_v52, %v1001_v23  ;;  %v1572_v36 = vadd.f32 %v1571_v53, %v1570_v51 }
 0x1ef   : > { %v1573_v55 = vpop.f32.mrf.mxu0  ;;  %v1110_v61 = vpop.f32.mrf.mxu1 }
 0x1f0   : > { %v1006_v56 = vadd.f32 %v1572_v36, %v2378_v43  ;;  %1158 = vxpose.xlu0.b32.cont [2/16] %v1098_v54, 128 }
 0x1f1   : > { %v1574_v45 = vpop.f32.mrf.mxu0  ;;  %v1642_v3 = vpop.f32.mrf.mxu1 }
 0x1f2   : > { %v1575_v58 = vadd.f32 %v1574_v45, %v1573_v55  ;;  %v1103_v59 = vadd.f32 %v1637_v42, %v1006_v56 }
 0x1f3   : > { %v1576_v1 = vpop.f32.mrf.mxu0  ;;  %v1113_v38 = vpop.f32.mrf.mxu1 }
 0x1f4   : > { %v1009_v60 = vadd.f32 %v1575_v58, %v2378_v43  ;;  %1159 = vxpose.xlu0.b32.cont [3/16] %v1103_v59, 128 }
 0x1f5   : > { %v1577_v62 = vpop.f32.mrf.mxu0  ;;  %v1645_v17 = vpop.f32.mrf.mxu1 }
 0x1f6   : > { %v1578_v63 = vadd.f32 %v1577_v62, %v1576_v1  ;;  %v1106_v0 = vadd.f32 %v1638_v18, %v1009_v60 }
 0x1f7   : > { %v1579_v12 = vpop.f32.mrf.mxu0  ;;  %v1126_v25 = vpop.f32.mrf.mxu1 }
 0x1f8   : > { %v1014_v2 = vadd.f32 %v1578_v63, %v2378_v43  ;;  %1160 = vxpose.xlu0.b32.cont [4/16] %v1106_v0, 128 }
 0x1f9   : > { %v1580_v5 = vpop.f32.mrf.mxu0  ;;  %v1646_v31 = vpop.f32.mrf.mxu1 }
 0x1fa   : > { %v1581_v19 = vadd.f32 %v1580_v5, %v1579_v12  ;;  %v1111_v7 = vadd.f32 %v1110_v61, %v1014_v2 }
 0x1fb   : > { %v1582_v8 = vpop.f32.mrf.mxu0  ;;  %v1129_v39 = vpop.f32.mrf.mxu1 }
 0x1fc   : > { %v1017_v9 = vadd.f32 %v1581_v19, %v2378_v43  ;;  %1161 = vxpose.xlu0.b32.cont [5/16] %v1111_v7, 128 }
 0x1fd   : > { %v1583_v10 = vpop.f32.mrf.mxu0  ;;  %v1649_v46 = vpop.f32.mrf.mxu1 }
 0x1fe   : > { %v1584_v11 = vadd.f32 %v1583_v10, %v1582_v8  ;;  %v1114_v13 = vadd.f32 %v1113_v38, %v1017_v9 }
 0x1ff   : > { %v1585_v14 = vpop.f32.mrf.mxu0  ;;  %v1142_v50 = vpop.f32.mrf.mxu1 }
 0x200   : > { %v1022_v15 = vadd.f32 %v1584_v11, %v2378_v43  ;;  %1162 = vxpose.xlu0.b32.cont [6/16] %v1114_v13, 128 }
 0x201   : > { %v1586_v16 = vpop.f32.mrf.mxu0  ;;  %v1650_v36 = vpop.f32.mrf.mxu1 }
 0x202   : > { %v1587_v20 = vadd.f32 %v1586_v16, %v1585_v14  ;;  %v1119_v21 = vadd.f32 %v1641_v57, %v1022_v15 }
 0x203   : > { %v1588_v22 = vpop.f32.mrf.mxu0  ;;  %v1145_v59 = vpop.f32.mrf.mxu1 }
 0x204   : > { %v1025_v24 = vadd.f32 %v1587_v20, %v2378_v43  ;;  %1163 = vxpose.xlu0.b32.cont [7/16] %v1119_v21, 128 }
 0x205   : > { %v1589_v26 = vpop.f32.mrf.mxu0 }
 0x206   : > { %v1590_v27 = vadd.f32 %v1589_v26, %v1588_v22  ;;  %v1122_v28 = vadd.f32 %v1642_v3, %v1025_v24 }
 0x207   : > { %v1591_v29 = vpop.f32.mrf.mxu0 }
 0x208   : > { %v1030_v30 = vadd.f32 %v1590_v27, %v2378_v43  ;;  %1164 = vxpose.xlu0.b32.cont [8/16] %v1122_v28, 128 }
 0x209   : > { %v1592_v32 = vpop.f32.mrf.mxu0 }
 0x20a   : > { %v1593_v33 = vadd.f32 %v1592_v32, %v1591_v29  ;;  %v1127_v34 = vadd.f32 %v1126_v25, %v1030_v30 }
 0x20b   : > { %v1594_v35 = vpop.f32.mrf.mxu0 }
 0x20c   : > { %v1033_v37 = vadd.f32 %v1593_v33, %v2378_v43  ;;  %1165 = vxpose.xlu0.b32.cont [9/16] %v1127_v34, 128 }
 0x20d   : > { %v1595_v40 = vpop.f32.mrf.mxu0 }
 0x20e   : > { %v1596_v41 = vadd.f32 %v1595_v40, %v1594_v35  ;;  %v1130_v4 = vadd.f32 %v1129_v39, %v1033_v37 }
 0x20f   : > { %v1597_v42 = vpop.f32.mrf.mxu0 }
 0x210   : > { %v1038_v44 = vadd.f32 %v1596_v41, %v2378_v43  ;;  %1166 = vxpose.xlu0.b32.cont [10/16] %v1130_v4, 128 }
 0x211   : > { %v1598_v6 = vpop.f32.mrf.mxu0 }
 0x212   : > { %v1599_v47 = vadd.f32 %v1598_v6, %v1597_v42  ;;  %v1135_v48 = vadd.f32 %v1645_v17, %v1038_v44 }
 0x213   : > { %v1600_v18 = vpop.f32.mrf.mxu0 }
 0x214   : > { %v1041_v49 = vadd.f32 %v1599_v47, %v2378_v43  ;;  %1167 = vxpose.xlu0.b32.cont [11/16] %v1135_v48, 128 }
 0x215   : > { %v1601_v51 = vpop.f32.mrf.mxu0 }
 0x216   : > { %v1602_v23 = vadd.f32 %v1601_v51, %v1600_v18  ;;  %v1138_v52 = vadd.f32 %v1646_v31, %v1041_v49 }
 0x217   : > { %v1603_v53 = vpop.f32.mrf.mxu0 }
 0x218   : > { %v1046_v54 = vadd.f32 %v1602_v23, %v2378_v43  ;;  %1168 = vxpose.xlu0.b32.cont [12/16] %v1138_v52, 128 }
 0x219   : > { %v1604_v55 = vpop.f32.mrf.mxu0 }
 0x21a   : > { %v1605_v56 = vadd.f32 %v1604_v55, %v1603_v53  ;;  %v1143_v45 = vadd.f32 %v1142_v50, %v1046_v54  ;;  %v1265_v53 = vld [vmem:[%s2403_s6] sm:$0xff] }
 0x21b   : > { %v1606_v57 = vpop.f32.mrf.mxu0 }
 0x21c   : > { %v1049_v58 = vadd.f32 %v1605_v56, %v2378_v43  ;;  %1169 = vxpose.xlu0.b32.cont [13/16] %v1143_v45, 128 }
 0x21d   : > { %v1607_v1 = vpop.f32.mrf.mxu0 }
 0x21e   : > { %v1608_v60 = vadd.f32 %v1607_v1, %v1606_v57  ;;  %v1146_v61 = vadd.f32 %v1145_v59, %v1049_v58  ;;  %v1266_v1 = vld [vmem:[%s2403_s6 + $0x8] sm:$0xff] }
 0x21f   : > { %v1609_v62 = vpop.f32.mrf.mxu0 }
 0x220   : > { %v1054_v63 = vadd.f32 %v1608_v60, %v2378_v43  ;;  %1170 = vxpose.xlu0.b32.cont [14/16] %v1146_v61, 128 }
 0x221   : > { %v1610_v0 = vpop.f32.mrf.mxu0 }
 0x222   : > { %v1611_v12 = vadd.f32 %v1610_v0, %v1609_v62  ;;  %v1151_v2 = vadd.f32 %v1649_v46, %v1054_v63 }
 0x224   : > { %v1057_v3 = vadd.f32 %v1611_v12, %v2378_v43  ;;  %1171 = vxpose.xlu0.b32.cont [15/16] %v1151_v2, 128 }
 0x226   : > { %v1154_v5 = vadd.f32 %v1650_v36, %v1057_v3 }
 0x228   : > { %1172 = vxpose.xlu0.b32.end [16/16] %v1154_v5, 128  ;;  %v1267_v5 = vld [vmem:[%s2403_s6 + $0x10] sm:$0xff] }
 0x268   : > { %v1173_v19 = vpop.trf.xlu0 }
 0x269   : > { %v1528_v13 = vmul.f32 -1.442695, %v1173_v19 }
 0x26c   : > { %v1174_v7 = vpop.trf.xlu0 }
 0x26d   : > { %v1529_v16 = vmul.f32 -1.442695, %v1174_v7 }
 0x270   : > { %v1175_v8 = vpop.trf.xlu0 }
 0x271   : > { %v1530_v43 = vmul.f32 -1.442695, %v1175_v8 }
 0x274   : > { %v1176_v9 = vpop.trf.xlu0 }
 0x275   : > { %v1531_v24 = vmul.f32 -1.442695, %v1176_v9 }
 0x278   : > { %v1177_v38 = vpop.trf.xlu0 }
 0x279   : > { %v1532_v11 = vmul.f32 -1.442695, %v1177_v38 }
 0x27b   : > { %1777 = vpow2.f32 %v1532_v11 }
 0x27c   : > { %v1178_v10 = vpop.trf.xlu0  ;;  %1779 = vpow2.f32 %v1528_v13 }
 0x27d   : > { %v1533_v15 = vmul.f32 -1.442695, %v1178_v10 }
 0x27f   : > { %1781 = vpow2.f32 %v1533_v15 }
 0x280   : > { %v1179_v14 = vpop.trf.xlu0  ;;  %1783 = vpow2.f32 %v1529_v16 }
 0x281   : > { %v1534_v20 = vmul.f32 -1.442695, %v1179_v14  ;;  %v1268_v14 = vld [vmem:[%s2403_s6 + $0x18] sm:$0xff]  ;;  %s1845_s6 = sshll.u32 %s1969_s27, 4  ;;  %s1846_s6 = int_to_ptr.vmem [resolvable:$false] %s1845_s6 }
 0x282   : > { %s1847_s11 = scalar_lea.vmem %s1846_s6, 1024  ;;  %p1848_p5 = scmp.lt.s32.totalorder %s2428_s16, %s1846_s6 }
 0x283   : > { %1785 = vpow2.f32 %v1534_v20  ;;  %p1849_p6 = scmp.lt.s32.totalorder %s1847_s11, %s1841_s17 }
 0x284   : > { %v1180_v17 = vpop.trf.xlu0  ;;  %1787 = vpow2.f32 %v1530_v43 }
 0x285   : > { %v1535_v22 = vmul.f32 -1.442695, %v1180_v17  ;;  %p1850_p7 = por %p1849_p6, %p1848_p5 }
 0x287   : > { %1789 = vpow2.f32 %v1535_v22  ;;  %p1851_p10 = pnand %p1850_p7, %p1844_p4 }
 0x288   : > { %v1181_v21 = vpop.trf.xlu0  ;;  %v1778_v26 = vpop.eup %1777  ;;  %1791 = vpow2.f32 %v1531_v24 }
 0x289   : > { %v1780_v28 = vpop.eup %1779  ;;  %v1536_v29 = vmul.f32 -1.442695, %v1181_v21  ;;  %v1225_v30 = vadd.f32 1.0, %v1778_v26 }
 0x28a   : > { %v1201_v32 = vadd.f32 1.0, %v1780_v28 }
 0x28b   : > { %1793 = vpow2.f32 %v1536_v29 }
 0x28c   : > { %v1182_v25 = vpop.trf.xlu0  ;;  %v1782_v31 = vpop.eup %1781  ;;  %1795 = vrcp.f32 %v1225_v30 }
 0x28d   : > { %v1784_v34 = vpop.eup %1783  ;;  %v1537_v35 = vmul.f32 -1.442695, %v1182_v25  ;;  %v1226_v37 = vadd.f32 1.0, %v1782_v31  ;;  %1797 = vrcp.f32 %v1201_v32 }
 0x28e   : > { %v1202_v40 = vadd.f32 1.0, %v1784_v34 }
 0x290   : > { %v1183_v27 = vpop.trf.xlu0  ;;  %v1786_v39 = vpop.eup %1785 }
 0x291   : > { %v1788_v4 = vpop.eup %1787  ;;  %v1538_v42 = vmul.f32 -1.442695, %v1183_v27  ;;  %v1227_v44 = vadd.f32 1.0, %v1786_v39 }
 0x292   : > { %v1203_v46 = vadd.f32 1.0, %v1788_v4 }
 0x294   : > { %v1184_v33 = vpop.trf.xlu0  ;;  %v1790_v6 = vpop.eup %1789 }
 0x295   : > { %v1792_v48 = vpop.eup %1791  ;;  %v1539_v18 = vmul.f32 -1.442695, %v1184_v33  ;;  %v1228_v49 = vadd.f32 1.0, %v1790_v6 }
 0x296   : > { %v1204_v50 = vadd.f32 1.0, %v1792_v48 }
 0x298   : > { %v1185_v41 = vpop.trf.xlu0  ;;  %v1794_v23 = vpop.eup %1793 }
 0x299   : > { %1799 = vtanh.f32 %v1185_v41  ;;  %v1796_v52 = vpop.eup %1795  ;;  %v1249_v56 = vadd.f32 1.0, %v1794_v23 }
 0x29a   : > { %1801 = vpow2.f32 %v1537_v35  ;;  %v1798_v36 = vpop.eup %1797  ;;  %v1269_v57 = vmul.f32 %v1796_v52, %v1265_v53 }
 0x29b   : > { %1803 = vrcp.f32 %v1226_v37 }
 0x29c   : > { %1805 = vrcp.f32 %v1202_v40  ;;  %v1186_v47 = vpop.trf.xlu0 }
 0x29d   : > { %1807 = vtanh.f32 %v1186_v47 }
 0x29e   : > { %1809 = vpow2.f32 %v1538_v42 }
 0x29f   : > { %1811 = vrcp.f32 %v1227_v44 }
 0x2a0   : > { %1813 = vrcp.f32 %v1203_v46  ;;  %v1187_v51 = vpop.trf.xlu0 }
 0x2a1   : > { %1815 = vtanh.f32 %v1187_v51 }
 0x2a2   : > { %1817 = vpow2.f32 %v1539_v18 }
 0x2a3   : > { %1819 = vrcp.f32 %v1228_v49 }
 0x2a4   : > { %1821 = vrcp.f32 %v1204_v50  ;;  %v1188_v54 = vpop.trf.xlu0 }
 0x2a5   : > { %1823 = vtanh.f32 %v1188_v54 }
 0x2a6   : > { %v1800_v55 = vpop.eup %1799  ;;  %1825 = vrcp.f32 %v1249_v56 }
 0x2a7   : > { %v1802_v45 = vpop.eup %1801  ;;  %v1273_v58 = vmul.f32 %v1800_v55, %v1798_v36 }
 0x2a8   : > { %v1804_v59 = vpop.eup %1803  ;;  %v1250_v63 = vadd.f32 1.0, %v1802_v45 }
 0x2a9   : > { %v1806_v60 = vpop.eup %1805  ;;  %v1277_v61 = vadd.f32 %v1273_v58, %v1269_v57  ;;  %v1270_v12 = vmul.f32 %v1804_v59, %v1266_v1 }
 0x2aa   : > { %v1808_v62 = vpop.eup %1807 }
 0x2ab   : > { %v1810_v0 = vpop.eup %1809  ;;  %1827 = vtanh.f32 %v1277_v61  ;;  %1289 = vst [vmem:[%s2408_s10] sm:$0xff] %v1277_v61  ;;  %v1274_v2 = vmul.f32 %v1808_v62, %v1806_v60 }
 0x2ac   : > { %v1812_v3 = vpop.eup %1811  ;;  %1829 = vrcp.f32 %v1250_v63  ;;  %v1251_v9 = vadd.f32 1.0, %v1810_v0 }
 0x2ad   : > { %v1814_v19 = vpop.eup %1813  ;;  %v1278_v7 = vadd.f32 %v1274_v2, %v1270_v12  ;;  %v1271_v10 = vmul.f32 %v1812_v3, %v1267_v5 }
 0x2ae   : > { %v1816_v8 = vpop.eup %1815 }
 0x2af   : > { %v1818_v38 = vpop.eup %1817  ;;  %1831 = vtanh.f32 %v1278_v7  ;;  %1290 = vst [vmem:[%s2408_s10 + $0x8] sm:$0xff] %v1278_v7  ;;  %v1275_v11 = vmul.f32 %v1816_v8, %v1814_v19 }
 0x2b0   : > { %v1820_v13 = vpop.eup %1819  ;;  %1833 = vrcp.f32 %v1251_v9  ;;  %v1252_v20 = vadd.f32 1.0, %v1818_v38 }
 0x2b1   : > { %v1822_v15 = vpop.eup %1821  ;;  %v1279_v16 = vadd.f32 %v1275_v11, %v1271_v10  ;;  %v1272_v43 = vmul.f32 %v1820_v13, %v1268_v14 }
 0x2b2   : > { %v1824_v17 = vpop.eup %1823 }
 0x2b3   : > { %1835 = vtanh.f32 %v1279_v16  ;;  %1291 = vst [vmem:[%s2408_s10 + $0x10] sm:$0xff] %v1279_v16  ;;  %v1276_v21 = vmul.f32 %v1824_v17, %v1822_v15  ;;  %v1826_v24 = vpop.eup %1825 }
 0x2b4   : > { %1837 = vrcp.f32 %v1252_v20 }
 0x2b5   : > { %v1280_v22 = vadd.f32 %v1276_v21, %v1272_v43 }
 0x2b7   : > { %1839 = vtanh.f32 %v1280_v22  ;;  %1292 = vst [vmem:[%s2408_s10 + $0x18] sm:$0xff] %v1280_v22 }
 0x2b8   : > { %v1828_v25 = vpop.eup %1827 }
 0x2b9   : > { %1854 = shalt.err (!%p1851_p10)
}
 0x2ba   : > { %s1855_s10 = scalar_lea.hbm %s2426_s15, 512  ;;  %s1859_s27 = scalar_lea.hbm %s2524_s5, 2048 }
 0x2bb   : > { %p1856_p11 = scmp.ne.s32.totalorder %s2426_s15, %s1855_s10  ;;  %p1860_p0 = scmp.lt.s32.totalorder %s2426_s15, %s2524_s5 }
 0x2bc   : > { %p1861_p1 = scmp.lt.s32.totalorder %s1859_s27, %s1855_s10 }
 0x2bd   : > { %p1857_p12 = pnand %p1856_p11, %p2064_p8 }
 0x2be   : > { %p1862_p2 = por %p1861_p1, %p1860_p0 }
 0x2bf   : > { %p1858_p13 = pneg %p1857_p12 }
 0x2c1   : > { %p1863_p3 = pnand %p1862_p2, %p1858_p13 }
 0x2c3   : > { %1866 = shalt.err (!%p1863_p3)
}
 0x2c4   : > { %s2526_s17 = smov 128   ;;  %s1971_s6 = smov 256   ;;  %v1285_v26 = vmul.f32 %v1828_v25, %v1826_v24  ;;  %v1830_v27 = vpop.eup %1829 }
 0x2c5   : > { %s1972_s11 = smov 8   ;;  %s2530_s21 = scalar_lea.sflag [#allocation6], %s2397_s30  ;;  %v1832_v28 = vpop.eup %1831 }
 0x2c6   : > { %1654 = dma.vmem_to_hbm [thread:$0]  (%p2064_p8), %s2428_s16, 512, %s2426_s15, %s2530_s21, %s2526_s17, %s1971_s6, %s1972_s11   ;;  %v1286_v29 = vmul.f32 %v1832_v28, %v1830_v27  ;;  %v1834_v30 = vpop.eup %1833 }
 0x2c7   : > { %s318_s22 = scalar_lea.vmem [#allocation3], %s2400_s9  ;;  %v1836_v31 = vpop.eup %1835  ;;  %s2531_s10 = sshll.u32 %s2415_s13, 7 }
 0x2c8   : > { %1293 = vst [vmem:[%s318_s22] sm:$0xff] %v1285_v26  ;;  %1294 = vst [vmem:[%s318_s22 + $0x8] sm:$0xff] %v1286_v29  ;;  %v1287_v32 = vmul.f32 %v1836_v31, %v1834_v30  ;;  %s1317_s26 = sshll.u32 %s318_s22, 4  ;;  %v1838_v33 = vpop.eup %1837  ;;  %s2463_s14 = scalar_lea.hbm %s2523_s4, %s2531_s10  ;;  %s2465_s26 = int_to_ptr.vmem [resolvable:$true] %s1317_s26 }
 0x2c9   : > { %v1840_v34 = vpop.eup %1839  ;;  %s1298_s9 = scalar_lea.sflag [#allocation4], %s2397_s30  ;;  %s1867_s27 = scalar_lea.vmem %s2465_s26, 512 }
 0x2ca   : > { %1295 = vst [vmem:[%s318_s22 + $0x10] sm:$0xff] %v1287_v32  ;;  %v1288_v35 = vmul.f32 %v1840_v34, %v1838_v33  ;;  %p1868_p4 = scmp.ne.s32.totalorder %s2465_s26, %s1867_s27  ;;  %s1973_s21 = smov [#allocation3]  }
 0x2cb   : > { %s1871_s17 = sshll.u32 %s1973_s21, 4  ;;  %s1872_s17 = int_to_ptr.vmem [resolvable:$false] %s1871_s17 }
 0x2cc   : > { %1296 = vst [vmem:[%s318_s22 + $0x18] sm:$0xff] %v1288_v35  ;;  %p1869_p5 = pnand %p1868_p4, %p2064_p8  ;;  %s1873_s13 = scalar_lea.vmem %s1872_s17, 1024 }
 0x2cd   : > { %p1874_p7 = scmp.lt.s32.totalorder %s2465_s26, %s1872_s17  ;;  %p1875_p10 = scmp.lt.s32.totalorder %s1873_s13, %s1867_s27 }
 0x2ce   : > { %p1870_p6 = pneg %p1869_p5 }
 0x2cf   : > { %p1876_p11 = por %p1875_p10, %p1874_p7 }
 0x2d1   : > { %p1877_p12 = pnand %p1876_p11, %p1870_p6 }
 0x2d3   : > { %1880 = shalt.err (!%p1877_p12)
}
 0x2d4   : > { %s1881_s22 = scalar_lea.hbm %s2463_s14, 512  ;;  %s1885_s16 = scalar_lea.hbm %s2523_s4, 2048 }
 0x2d5   : > { %p1882_p13 = scmp.ne.s32.totalorder %s2463_s14, %s1881_s22  ;;  %p1886_p2 = scmp.lt.s32.totalorder %s2463_s14, %s2523_s4 }
 0x2d6   : > { %p1887_p3 = scmp.lt.s32.totalorder %s1885_s16, %s1881_s22 }
 0x2d7   : > { %p1883_p0 = pnand %p1882_p13, %p2064_p8 }
 0x2d8   : > { %p1888_p4 = por %p1887_p3, %p1886_p2 }
 0x2d9   : > { %p1884_p1 = pneg %p1883_p0 }
 0x2db   : > { %p1889_p5 = pnand %p1888_p4, %p1884_p1 }
 0x2dd   : > { %1892 = shalt.err (!%p1889_p5)
}
 0x2de   : > { %s2532_s17 = smov 128  }
 0x2df   : > { %1653 = dma.vmem_to_hbm [thread:$0]  (%p2064_p8), %s2465_s26, 512, %s2463_s14, %s1298_s9, %s2532_s17, %s1971_s6, %s1972_s11  }
 0x2e0 PF: > { %p1664_p6 = scmp.ge.s32.totalorder %s1963_s25, 2  ;;  %s1349_s27 = sand.u32 1, %s1935_s18  }
 0x2e1   : > { %s1350_s13 = scalar_lea.sflag [#allocation4], %s1349_s27 }
 0x2e2   : > { %p1658_p7 = pnand %p1664_p6, %p2068_p9 }
 0x2e4   : > { %p1659_p10 = pneg %p1658_p7 }
 0x2e6   : > { %1926 = dma.done.wait (%p1659_p10), %s1350_s13, 512  }
 0x2e7   : > { %1928 = vsyncadd (%p1659_p10), %s1350_s13, 4294966784  ;;  %s1359_s22 = scalar_lea.sflag [#allocation6], %s1349_s27 }
 0x2e8   : > { %1930 = dma.done.wait (%p1659_p10), %s1359_s22, 512  }
 0x2e9   : > { %1932 = vsyncadd (%p1659_p10), %s1359_s22, 4294966784  ;;  %s22_s25 = sadd.s32 1, %s1963_s25   ;;  %s2533_s18 = smov %s1939_s19 }
 0x2ea   : > { %p19_p11 = scmp.ge.s32.totalorder %s22_s25, 6   ;;  %s2534_s19 = smov %s1943_s20 }
 0x2eb   : > { %s2535_s20 = smov %s2076_s12  ;;  %s2536_s21 = smov %s1955_s23 }
 0x2ec   : > { %s2537_s22 = smov %s1959_s24  ;;  %s2538_s23 = smov %s2541_s28 }
 0x2ed   : > { %s2539_s24 = smov %s2545_s29  ;;  %21 = sbr.rel (!%p19_p11) target bundleno = 7 (0x7), region = 134 }
 0x2f2   :  { %1364 = vsyncpa [#allocation4], 1 }
 0x2f3   :  { %1366 = vsyncpa [#allocation4 + $0x1], 1 }
 0x2f4   :  { %1367 = vsyncpa [#allocation6], 1 }
 0x2f5   :  { %1369 = vsyncpa [#allocation6 + $0x1], 1 }

</bundles_post_ra>
